<compile_context>
chip_gen: v7x
topology: tpu7x:2x2x1
jax: 0.10.0
libtpu: 0.0.40
codegen_flags: <defaults>
</compile_context>

<pallas_src>
import jax
import jax.numpy as jnp
from jax.experimental import pallas as pl
from jax.experimental.pallas import tpu as pltpu


def _vitmae_output_kernel(x_ref, w_ref, b_ref, g_ref, r_ref, o_ref, acc_ref):
    # x_ref:   (tm, tk)   activation tile
    # w_ref:   (tk, tn)   weight tile
    # b_ref:   (1,  tn)   bias (f32, resident across K steps)
    # g_ref:   (1,  tn)   LayerScale gamma (f32, resident across K steps)
    # r_ref:   (tm, tn)   residual tile (resident across K steps)
    # o_ref:   (tm, tn)   output tile
    # acc_ref: (tm, tn)   f32 accumulator scratch
    k = pl.program_id(2)

    @pl.when(k == 0)
    def _():
        acc_ref[...] = jnp.zeros_like(acc_ref)

    acc_ref[...] += jnp.dot(
        x_ref[...], w_ref[...], preferred_element_type=jnp.float32
    )

    @pl.when(k == pl.num_programs(2) - 1)
    def _():
        # Epilogue in f32: bias add, LayerScale, residual add, then cast once.
        y = (acc_ref[...] + b_ref[...]) * g_ref[...]
        y = y + r_ref[...].astype(jnp.float32)
        o_ref[...] = y.astype(o_ref.dtype)


def _round_up(x: int, m: int) -> int:
    return ((x + m - 1) // m) * m


def _pick_divisor(dim: int, candidates) -> int:
    """Largest candidate evenly dividing `dim`, else the full dim."""
    for c in candidates:
        if dim % c == 0:
            return c
    return dim


def _choose_tiles(M, N, K, x_isz, w_isz, r_isz, o_isz,
                  budget_bytes=24 << 20):
    """Pick (tm, tn, tk, M_pad) keeping double-buffered blocks under budget."""
    # Lane dims (tn, tk-as-lane-of-x) must be multiples of 128 or the full dim.
    tn = _pick_divisor(N, (512, 256, 128))
    tk = _pick_divisor(K, (2048, 1024, 512, 256, 128))

    def vmem_bytes(tm, tk_):
        return (2 * (tm * tk_ * x_isz          # x (double buffered)
                     + tk_ * tn * w_isz        # W
                     + tm * tn * r_isz         # residual
                     + 2 * tn * 4)             # bias + gamma (f32)
                + 2 * tm * tn * o_isz          # output
                + tm * tn * 4)                 # f32 accumulator scratch

    # Row tile: prefer an exact divisor of M; otherwise pad rows.
    tm = None
    for c in (512, 256, 128, 64, 32, 16, 8):
        if M % c == 0:
            tm = c
            break
    if tm is None:
        tm = 256 if M > 256 else _round_up(M, 8)

    # Shrink K tile, then row tile, if we would blow the VMEM budget.
    while vmem_bytes(tm, tk) > budget_bytes:
        if tk > 128 and K % (tk // 2) == 0:
            tk //= 2
        elif tm > 8:
            tm = max(8, tm // 2)
        else:
            break

    M_pad = _round_up(M, tm)
    return tm, tn, tk, M_pad


@jax.jit
def vitmae_output(hidden_states: jax.Array,
                  weight: jax.Array,
                  bias: jax.Array,
                  gamma: jax.Array,
                  input_tensor: jax.Array) -> jax.Array:
    """Fused Linear + LayerScale + residual.

    hidden_states: [B, S, K]  (K = intermediate_size)
    weight:        [K, N]     (already transposed from PyTorch's [N, K])
    bias:          [N]
    gamma:         [N]        (LayerScale per-channel scale)
    input_tensor:  [B, S, N]  (residual)
    returns:       [B, S, N]  in hidden_states.dtype
    """
    B, S, K = hidden_states.shape
    N = weight.shape[1]
    M = B * S

    # Flatten batch/seq into one row axis so tiling depends only on total rows.
    x2 = hidden_states.reshape(M, K)
    r2 = input_tensor.reshape(M, N)
    # Keep bias / gamma in f32 so the epilogue runs at full precision and only
    # the final result is cast to the activation dtype.
    b2 = bias.reshape(1, N).astype(jnp.float32)
    g2 = gamma.reshape(1, N).astype(jnp.float32)

    tm, tn, tk, M_pad = _choose_tiles(
        M, N, K,
        x2.dtype.itemsize, weight.dtype.itemsize,
        r2.dtype.itemsize, hidden_states.dtype.itemsize,
    )

    if M_pad != M:
        # Zero-padded rows contribute nothing we keep (sliced off below).
        x2 = jnp.pad(x2, ((0, M_pad - M), (0, 0)))
        r2 = jnp.pad(r2, ((0, M_pad - M), (0, 0)))

    grid = (M_pad // tm, N // tn, K // tk)

    out2 = pl.pallas_call(
        _vitmae_output_kernel,
        out_shape=jax.ShapeDtypeStruct((M_pad, N), hidden_states.dtype),
        grid_spec=pltpu.PrefetchScalarGridSpec(
            num_scalar_prefetch=0,
            grid=grid,
            in_specs=[
                pl.BlockSpec((tm, tk), lambda i, j, k: (i, k)),   # x
                pl.BlockSpec((tk, tn), lambda i, j, k: (k, j)),   # W
                pl.BlockSpec((1, tn), lambda i, j, k: (0, j)),    # bias
                pl.BlockSpec((1, tn), lambda i, j, k: (0, j)),    # gamma
                pl.BlockSpec((tm, tn), lambda i, j, k: (i, j)),   # residual
            ],
            out_specs=pl.BlockSpec((tm, tn), lambda i, j, k: (i, j)),
            scratch_shapes=[pltpu.VMEM((tm, tn), jnp.float32)],
        ),
        compiler_params=pltpu.CompilerParams(
            dimension_semantics=("parallel", "parallel", "arbitrary"),
            vmem_limit_bytes=48 << 20,   # stays under v7x's 64 MiB physical VMEM
        ),
    )(x2, weight, b2, g2, r2)

    if M_pad != M:
        out2 = out2[:M]
    return out2.reshape(B, S, N)


if __name__ == "__main__":
    # Small, deterministic shapes consistent with the module.
    batch, seq = 2, 8
    hidden_size = 32          # config.hidden_size
    intermediate_size = 64    # config.intermediate_size
    layerscale_init_values = 0.1

    key = jax.random.PRNGKey(0)
    k1, k2, k3, k4 = jax.random.split(key, 4)

    hidden_states = jax.random.normal(
        k1, (batch, seq, intermediate_size), dtype=jnp.float32)
    input_tensor = jax.random.normal(
        k2, (batch, seq, hidden_size), dtype=jnp.float32)

    # Linear params (weight stored [in, out] = [K, N]) and LayerScale gamma.
    weight = jax.random.normal(
        k3, (intermediate_size, hidden_size), dtype=jnp.float32) * 0.02
    bias = jax.random.normal(k4, (hidden_size,), dtype=jnp.float32) * 0.02
    gamma = layerscale_init_values * jnp.ones((hidden_size,), dtype=jnp.float32)

    out = vitmae_output(hidden_states, weight, bias, gamma, input_tensor)
    jax.block_until_ready(out)

    # Plain-JAX reference of the PyTorch forward (eval mode: dropout/drop_path
    # are identity).
    ref = (jnp.einsum("bsk,kn->bsn", hidden_states, weight) + bias) * gamma
    ref = ref + input_tensor

    assert out.shape == input_tensor.shape and out.dtype == hidden_states.dtype
    assert jnp.allclose(out, ref, atol=1e-5, rtol=1e-5), (
        float(jnp.max(jnp.abs(out - ref))))

    print("KERNEL_OK")
</pallas_src>

<mosaic_0001>
module attributes {stable_mosaic.version = 11 : i64} {
  func.func @_vitmae_output_kernel(%arg0: i32, %arg1: i32, %arg2: i32, %arg3: memref<16x64xf32, #tpu.memory_space<vmem>>, %arg4: memref<64x32xf32, #tpu.memory_space<vmem>>, %arg5: memref<1x32xf32, #tpu.memory_space<vmem>>, %arg6: memref<1x32xf32, #tpu.memory_space<vmem>>, %arg7: memref<16x32xf32, #tpu.memory_space<vmem>>, %arg8: memref<16x32xf32, #tpu.memory_space<vmem>>, %arg9: memref<16x32xf32, #tpu.memory_space<vmem>>) attributes {dimension_semantics = [#tpu.dimension_semantics<parallel>, #tpu.dimension_semantics<parallel>, #tpu.dimension_semantics<arbitrary>], iteration_bounds = array<i64: 1, 1, 1>, scalar_prefetch = 0 : i64, scratch_operands = 1 : i64, tpu.core_type = #tpu.core_type<tc>, window_params = [{transform_indices = @transform_0, window_bounds = array<i64: 16, 64>}, {transform_indices = @transform_1, window_bounds = array<i64: 64, 32>}, {transform_indices = @transform_2, window_bounds = array<i64: 1, 32>}, {transform_indices = @transform_3, window_bounds = array<i64: 1, 32>}, {transform_indices = @transform_4, window_bounds = array<i64: 16, 32>}, {transform_indices = @transform_5, window_bounds = array<i64: 16, 32>}]} {
    %c0_i32 = arith.constant 0 : i32
    %0 = arith.cmpi eq, %arg2, %c0_i32 : i32
    %1 = arith.extui %0 : i1 to i32
    %c0_i32_0 = arith.constant 0 : i32
    %2 = arith.cmpi ne, %1, %c0_i32_0 : i32
    scf.if %2 {
      %cst_10 = arith.constant 0.000000e+00 : f32
      %12 = vector.broadcast %cst_10 : f32 to vector<16x32xf32>
      %c0_11 = arith.constant 0 : index
      %c0_12 = arith.constant 0 : index
      %13 = vector.load %arg9[%c0_11, %c0_12] : memref<16x32xf32, #tpu.memory_space<vmem>>, vector<16x32xf32>
      tpu.vector_store %arg9[%c0_11, %c0_12], %12 {strides = array<i32>} : memref<16x32xf32, #tpu.memory_space<vmem>>, vector<16x32xf32>,
    } else {
    }
    %c0 = arith.constant 0 : index
    %c0_1 = arith.constant 0 : index
    %3 = vector.load %arg9[%c0, %c0_1] : memref<16x32xf32, #tpu.memory_space<vmem>>, vector<16x32xf32>
    %c0_2 = arith.constant 0 : index
    %c0_3 = arith.constant 0 : index
    %4 = vector.load %arg3[%c0_2, %c0_3] : memref<16x64xf32, #tpu.memory_space<vmem>>, vector<16x64xf32>
    %c0_4 = arith.constant 0 : index
    %c0_5 = arith.constant 0 : index
    %5 = vector.load %arg4[%c0_4, %c0_5] : memref<64x32xf32, #tpu.memory_space<vmem>>, vector<64x32xf32>
    %cst = arith.constant dense<0.000000e+00> : vector<16x32xf32>
    %6 = tpu.matmul %4, %5, %cst {dimension_numbers = #tpu.dot_dimension_numbers<[1], [0], [0], [1], [0, 0, 1, 1], [], []>} : vector<16x64xf32>, vector<64x32xf32>, vector<16x32xf32> -> vector<16x32xf32>
    %7 = arith.addf %3, %6 : vector<16x32xf32>
    %c0_6 = arith.constant 0 : index
    %c0_7 = arith.constant 0 : index
    %8 = vector.load %arg9[%c0_6, %c0_7] : memref<16x32xf32, #tpu.memory_space<vmem>>, vector<16x32xf32>
    tpu.vector_store %arg9[%c0_6, %c0_7], %7 {strides = array<i32>} : memref<16x32xf32, #tpu.memory_space<vmem>>, vector<16x32xf32>,
    %c0_i32_8 = arith.constant 0 : i32
    %9 = arith.cmpi eq, %arg2, %c0_i32_8 : i32
    %10 = arith.extui %9 : i1 to i32
    %c0_i32_9 = arith.constant 0 : i32
    %11 = arith.cmpi ne, %10, %c0_i32_9 : i32
    scf.if %11 {
      %c0_10 = arith.constant 0 : index
      %c0_11 = arith.constant 0 : index
      %12 = vector.load %arg9[%c0_10, %c0_11] : memref<16x32xf32, #tpu.memory_space<vmem>>, vector<16x32xf32>
      %c0_12 = arith.constant 0 : index
      %c0_13 = arith.constant 0 : index
      %13 = vector.load %arg5[%c0_12, %c0_13] : memref<1x32xf32, #tpu.memory_space<vmem>>, vector<1x32xf32>
      %14 = vector.broadcast %13 : vector<1x32xf32> to vector<16x32xf32>
      %15 = arith.addf %12, %14 : vector<16x32xf32>
      %c0_14 = arith.constant 0 : index
      %c0_15 = arith.constant 0 : index
      %16 = vector.load %arg6[%c0_14, %c0_15] : memref<1x32xf32, #tpu.memory_space<vmem>>, vector<1x32xf32>
      %17 = vector.broadcast %16 : vector<1x32xf32> to vector<16x32xf32>
      %18 = arith.mulf %15, %17 : vector<16x32xf32>
      %c0_16 = arith.constant 0 : index
      %c0_17 = arith.constant 0 : index
      %19 = vector.load %arg7[%c0_16, %c0_17] : memref<16x32xf32, #tpu.memory_space<vmem>>, vector<16x32xf32>
      %20 = arith.addf %18, %19 : vector<16x32xf32>
      %c0_18 = arith.constant 0 : index
      %c0_19 = arith.constant 0 : index
      %21 = vector.load %arg8[%c0_18, %c0_19] : memref<16x32xf32, #tpu.memory_space<vmem>>, vector<16x32xf32>
      tpu.vector_store %arg8[%c0_18, %c0_19], %20 {strides = array<i32>} : memref<16x32xf32, #tpu.memory_space<vmem>>, vector<16x32xf32>,
    } else {
    }
    return
  }
  func.func @transform_0(%arg0: i32, %arg1: i32, %arg2: i32) -> (i32, i32) {
    %c0_i32 = arith.constant 0 : i32
    return %arg0, %arg2 : i32, i32
  }
  func.func @transform_1(%arg0: i32, %arg1: i32, %arg2: i32) -> (i32, i32) {
    %c0_i32 = arith.constant 0 : i32
    return %arg2, %arg1 : i32, i32
  }
  func.func @transform_2(%arg0: i32, %arg1: i32, %arg2: i32) -> (i32, i32) {
    %c0_i32 = arith.constant 0 : i32
    %c0_i32_0 = arith.constant 0 : i32
    return %c0_i32, %arg1 : i32, i32
  }
  func.func @transform_3(%arg0: i32, %arg1: i32, %arg2: i32) -> (i32, i32) {
    %c0_i32 = arith.constant 0 : i32
    %c0_i32_0 = arith.constant 0 : i32
    return %c0_i32, %arg1 : i32, i32
  }
  func.func @transform_4(%arg0: i32, %arg1: i32, %arg2: i32) -> (i32, i32) {
    %c0_i32 = arith.constant 0 : i32
    return %arg0, %arg1 : i32, i32
  }
  func.func @transform_5(%arg0: i32, %arg1: i32, %arg2: i32) -> (i32, i32) {
    %c0_i32 = arith.constant 0 : i32
    return %arg0, %arg1 : i32, i32
  }
}

</mosaic_0001>

<bundles_post_ra>
// kernel: vitmae_output.1
= control target key start
LH: loop header
LB: loop body
LE: loop exit
PB: predicated region body
PF: predicated region fallthrough
CT: control target
= control target key end

     0   :  { %vm40_vm0 = vcmask 523264   ;;  %vm25_vm1 = vcmask 261120   ;;  %v249_v5 = vmov 0.0   ;;  %s345_s0 = inlined_call_operand.vmem [shape: f32[16,64], index: 0, kind: input, shape index: {}]   ;;  %s346_s1 = inlined_call_operand.vmem [shape: f32[64,32], index: 1, kind: input, shape index: {}]   ;;  %s347_s2 = inlined_call_operand.vmem [shape: f32[1,32], index: 2, kind: input, shape index: {}]   ;;  %s348_s3 = inlined_call_operand.vmem [shape: f32[1,32], index: 3, kind: input, shape index: {}]   ;;  %s349_s4 = inlined_call_operand.vmem [shape: f32[16,32], index: 4, kind: input, shape index: {}]   ;;  %s350_s5 = inlined_call_operand.hbm [shape: f32[16,32], index: 5, kind: output, shape index: {}]  }
   0x1   :  { %v32_v0 = vld [vmem:[%s346_s1] sm:$0xff]  ;;  %v33_v1 = vld [vmem:[%s346_s1 + $0x8] sm:$0xff]  ;;  %v34_v2 = vld [vmem:[%s346_s1 + $0x10] sm:$0xff]  ;;  %27 = vst.msk [vmem:[#allocation2 + $0x8] sm:$0xff] %vm25_vm1, %v249_v5 }
   0x2   :  { %v205_v3 = vpack.c.bf16 %v33_v1, %v32_v0  ;;  %v35_v4 = vld [vmem:[%s346_s1 + $0x18] sm:$0xff]  ;;  %26 = vst.msk [vmem:[#allocation2] sm:$0xff] %vm25_vm1, %v249_v5  ;;  %v36_v7 = vld [vmem:[%s346_s1 + $0x20] sm:$0xff]  ;;  %v37_v8 = vld [vmem:[%s346_s1 + $0x28] sm:$0xff] }
   0x3   :  { %v209_v6 = vpack.c.bf16 %v35_v4, %v34_v2  ;;  %v30_v9 = vld [vmem:[%s345_s0] sm:$0xff] }
   0x4   :  { %206 = vmatprep.subr.bf16.mxu0 %v205_v3  ;;  %202 = vmatprep.mubr.msk.f32.mxu0 %vm40_vm0, %v30_v9 }
   0x5   :  { %10 = vsyncpa [#allocation4], 0  ;;  %208 = vmatpush3.bf16.msra.mxu0 %v205_v3  ;;  %v213_v10 = vpack.c.bf16 %v37_v8, %v36_v7  ;;  %v38_v11 = vld [vmem:[%s346_s1 + $0x30] sm:$0xff]  ;;  %v39_v12 = vld [vmem:[%s346_s1 + $0x38] sm:$0xff]  ;;  %s250_s17 = smov [#allocation3]  }
   0x6   :  { %210 = vmatprep.subr.bf16.mxu0 %v209_v6  ;;  %v217_v13 = vpack.c.bf16 %v39_v12, %v38_v11  ;;  %v31_v14 = vld [vmem:[%s345_s0 + $0x8] sm:$0xff]  ;;  %v174_v21 = vld [vmem:[%s347_s2] ss:$0 sm:$0xff]  ;;  %s161_s18 = sshll.u32 %s250_s17, 4  ;;  %s162_s18 = int_to_ptr.vmem [resolvable:$true] %s161_s18 }
   0x7   :  { %v175_v23 = vld [vmem:[%s348_s3] ss:$0 sm:$0xff]  ;;  %v151_v27 = vld [vmem:[%s349_s4 + $0x8] sm:$0xff]  ;;  %s225_s2 = scalar_lea.vmem %s162_s18, 256  ;;  %p230_p1 = scmp.lt.s32.totalorder %s162_s18, %s162_s18 }
   0x8   :  { %v29_v15 = vld [vmem:[#allocation2 + $0x8] sm:$0xff]  ;;  %v150_v29 = vld [vmem:[%s349_s4] sm:$0xff]  ;;  %p226_p0 = scmp.ne.s32.totalorder %s162_s18, %s225_s2  ;;  %p231_p2 = scmp.lt.s32.totalorder %s225_s2, %s225_s2 }
   0x9   :  { %212 = vmatpush3.bf16.msra.mxu0 %v209_v6  ;;  %v28_v16 = vld [vmem:[#allocation2] sm:$0xff] }
   0xa   :  { %214 = vmatprep.subr.bf16.mxu0 %v213_v10  ;;  %p232_p3 = por %p231_p2, %p230_p1 }
   0xc   :  { %p233_p4 = pnand %p232_p3, %p226_p0 }
   0xd   :  { %216 = vmatpush3.bf16.msra.mxu0 %v213_v10 }
   0xe   :  { %218 = vmatprep.subr.bf16.mxu0 %v217_v13 }
  0x11   :  { %220 = vmatpush3.bf16.msra.mxu0 %v217_v13 }
  0x14   :  { %203 = vmatmul.mubr.msk.f32.vlgmr.msra.gmra.mrb[0].mxu0 %vm40_vm0, %v31_v14 }
  0xe7   :  { %v204_v17 = vpop.f32.mrb[0].mxu0 }
  0xe8   :  { %v123_v18 = vadd.f32 %v204_v17, %v29_v15  ;;  %v113_v19 = vpop.f32.mrb[1].mxu0 }
  0xe9   :  { %v122_v20 = vadd.f32 %v113_v19, %v28_v16 }
  0xea   :  { %126 = vst.msk [vmem:[#allocation2 + $0x8] sm:$0xff] %vm25_vm1, %v123_v18 }
  0xeb   :  { %125 = vst.msk [vmem:[#allocation2] sm:$0xff] %vm25_vm1, %v122_v20 }
  0xf1   :  { %v131_v22 = vld [vmem:[#allocation2 + $0x8] sm:$0xff] }
  0xf2   :  { %v130_v24 = vld [vmem:[#allocation2] sm:$0xff]  ;;  %v140_v25 = vadd.f32 %v174_v21, %v131_v22 }
  0xf3   :  { %v139_v26 = vadd.f32 %v174_v21, %v130_v24 }
  0xf4   :  { %v149_v28 = vmul.f32 %v175_v23, %v140_v25 }
  0xf5   :  { %v148_v30 = vmul.f32 %v175_v23, %v139_v26 }
  0xf6   :  { %v153_v31 = vadd.f32 %v151_v27, %v149_v28 }
  0xf7   :  { %v152_v32 = vadd.f32 %v150_v29, %v148_v30 }
  0xf8   :  { %155 = vst.msk [vmem:[#allocation3 + $0x8] sm:$0xff] %vm25_vm1, %v153_v31 }
  0xf9   :  { %154 = vst.msk [vmem:[#allocation3] sm:$0xff] %vm25_vm1, %v152_v32 }
  0xfa   :  { %236 = shalt.err (!%p233_p4)
}
  0xfb   :  { %s237_s22 = scalar_lea.hbm %s350_s5, 256 }
  0xfc   :  { %p238_p5 = scmp.ne.s32.totalorder %s350_s5, %s237_s22  ;;  %p241_p6 = scmp.lt.u32.totalorder %s237_s22, %s350_s5 }
  0xfe   :  { %p243_p7 = pnand %p241_p6, %p238_p5 }
 0x100   :  { %246 = shalt.err (!%p243_p7)
}
 0x101   :  { %s251_s26 = smov 128   ;;  %s252_s27 = smov 8  }
 0x102   :  { %167 = dma.vmem_to_hbm [thread:$0]  %s162_s18, 256, %s350_s5, [#allocation4], %s251_s26, %s251_s26, %s252_s27  }
 0x103   :  { %247 = dma.done.wait [#allocation4], 256  }
 0x104   :  { %248 = vsyncadd [#allocation4], 4294967040 }
 0x105   :  { %171 = vsyncpa [#allocation4], 1 }

</bundles_post_ra>
